<compile_context>
chip_gen: v7x
topology: tpu7x:2x2x1
jax: 0.10.0
libtpu: 0.0.40
codegen_flags: <defaults>
</compile_context>

<pallas_src>
import functools

import jax
import jax.numpy as jnp
from jax.experimental import pallas as pl
from jax.experimental.pallas import tpu as pltpu


def _has_two_tensorcores() -> bool:
    """True only for chips with 2 TensorCores per device (v7x-class)."""
    try:
        kind = jax.devices()[0].device_kind.lower()
    except Exception:
        return False
    return ("v7" in kind) or ("7x" in kind)


def _tv_kernel(x_ref, h_ref, w_ref,
               acc_h_ref, acc_w_ref, mask_h_ref, mask_w_ref,
               *, img_w, nc_total, ragged):
    """One grid step: fold squared neighbour diffs of a (TB, HW) block.

    x_ref      : (TB, HW)   input block, one (n, c) image slice per row
    h_ref      : (8, 128)   per-core output tile, h-direction partial sum
    w_ref      : (8, 128)   per-core output tile, w-direction partial sum
    acc_h_ref  : (1, HW)    f32 running per-lane partial sums (persist)
    acc_w_ref  : (1, HW)    f32 running per-lane partial sums (persist)
    mask_h_ref : (1, HW)    f32 validity mask for vertical pairs (built once)
    mask_w_ref : (1, HW)    f32 validity mask for horizontal pairs (built once)
    """
    step = pl.program_id(1)
    tb, hw = x_ref.shape

    @pl.when(step == 0)
    def _init():
        # Masks hoisted out of the hot loop: built once per core, kept resident.
        col = jax.lax.broadcasted_iota(jnp.int32, (1, hw), 1)
        mask_h_ref[...] = (col < (hw - img_w)).astype(jnp.float32)
        mask_w_ref[...] = (col % img_w != img_w - 1).astype(jnp.float32)
        acc_h_ref[...] = jnp.zeros_like(acc_h_ref)
        acc_w_ref[...] = jnp.zeros_like(acc_w_ref)

    x = x_ref[...].astype(jnp.float32)  # cast in-kernel; DMA stays narrow for bf16

    # Bring the (j + W) / (j + 1) neighbours onto lane j with XLU rotations
    # (positive static shifts).  Wrapped tail lanes are invalid and zeroed by
    # the resident masks, keeping every array full (TB, HW) lane-aligned.
    xh = pltpu.roll(x, shift=hw - img_w, axis=1)
    xw = pltpu.roll(x, shift=hw - 1, axis=1)
    dh = (xh - x) * mask_h_ref[...]
    dw = (xw - x) * mask_w_ref[...]
    ch = dh * dh
    cw = dw * dw

    if ragged:
        # Last block extends past NC: zero out-of-range rows (select, NaN-safe).
        row0 = (pl.program_id(0) * pl.num_programs(1) + step) * tb
        row = jax.lax.broadcasted_iota(jnp.int32, (tb, 1), 0) + row0
        valid = row < nc_total
        ch = jnp.where(valid, ch, 0.0)
        cw = jnp.where(valid, cw, 0.0)

    # Per-step partial reduce over the TB rows only (VPU adds + sublane reduce);
    # accumulator RMW is a single (1, HW) row, not a full block.
    acc_h_ref[...] = acc_h_ref[...] + jnp.sum(ch, axis=0, keepdims=True)
    acc_w_ref[...] = acc_w_ref[...] + jnp.sum(cw, axis=0, keepdims=True)

    @pl.when(step == pl.num_programs(1) - 1)
    def _finalize():
        # Single cross-lane reduction per core, broadcast into a lane-dense
        # (8, 128) output tile.
        h_ref[...] = jnp.zeros_like(h_ref) + jnp.sum(acc_h_ref[...])
        w_ref[...] = jnp.zeros_like(w_ref) + jnp.sum(acc_w_ref[...])


def tv_loss(x, tv_loss_weight: float = 1.0):
    """x: (N, C, H, W). Returns a scalar float32 matching TVLoss.forward."""
    n, c, h, w = x.shape
    nc = n * c
    hw = h * w

    # Lane-dense layout: one image slice per row (contiguous -> free reshape).
    x2 = x.reshape(nc, hw)

    itemsize = jnp.dtype(x.dtype).itemsize
    slice_bytes = hw * itemsize
    sub = 8 * max(1, 4 // max(itemsize, 1))  # packed sublane tile: f32 8, bf16 16

    # Split across TensorCores only on chips that actually have two of them.
    multi_tc = _has_two_tensorcores()
    num_cores = 2 if (multi_tc and nc >= 2 * sub) else 1

    # Rows per block: a multiple of the sublane tile, sized toward the block
    # target (bigger blocks now that scratch is tiny), capped at one core's share.
    block_target = (8 << 20) if multi_tc else (4 << 20)
    budget_rows = max(sub, (block_target // max(slice_bytes, 1)) // sub * sub)
    per_core = -(-nc // num_cores)
    cap_rows = -(-per_core // sub) * sub
    tb = max(sub, min(budget_rows, cap_rows))
    if num_cores == 1 and nc <= budget_rows:
        # One block covers everything: block_shape == full array dims, so tb
        # need not be a sublane-tile multiple and no row mask is needed.
        tb = nc
    steps = -(-nc // (num_cores * tb))
    # Ragged final block handled with an in-kernel row mask (no concatenate copy).
    ragged = (num_cores * steps * tb) != nc
    # TODO(synk): for very large images where even a (sub, H*W) block exceeds
    # scoped VMEM, split H*W along the lane axis with a W-element halo.

    kernel = functools.partial(_tv_kernel, img_w=w, nc_total=nc, ragged=ragged)

    # VMEM budget from the actual footprint (double-buffered input + tiny scratch).
    block_bytes = tb * hw * itemsize
    scratch_bytes = 4 * 8 * hw * 4          # four (1, HW) f32 rows, 8-sublane padded
    vmem_limit = 2 * block_bytes + scratch_bytes + (4 << 20)
    vmem_limit = int(min(max(vmem_limit, 16 << 20),
                         (48 << 20) if multi_tc else (96 << 20)))

    core_sem = (getattr(pltpu, "CORE_PARALLEL", "parallel")
                if num_cores > 1 else "arbitrary")

    h_out, w_out = pl.pallas_call(
        kernel,
        out_shape=(
            jax.ShapeDtypeStruct((num_cores * 8, 128), jnp.float32),
            jax.ShapeDtypeStruct((num_cores * 8, 128), jnp.float32),
        ),
        grid_spec=pltpu.PrefetchScalarGridSpec(
            num_scalar_prefetch=0,
            grid=(num_cores, steps),
            in_specs=[
                pl.BlockSpec((tb, hw), lambda p, i: (p * steps + i, 0)),
            ],
            out_specs=[
                pl.BlockSpec((8, 128), lambda p, i: (p, 0)),
                pl.BlockSpec((8, 128), lambda p, i: (p, 0)),
            ],
            scratch_shapes=[
                pltpu.VMEM((1, hw), jnp.float32),   # acc_h
                pltpu.VMEM((1, hw), jnp.float32),   # acc_w
                pltpu.VMEM((1, hw), jnp.float32),   # mask_h
                pltpu.VMEM((1, hw), jnp.float32),   # mask_w
            ],
        ),
        compiler_params=pltpu.CompilerParams(
            dimension_semantics=(core_sem, "arbitrary"),
            vmem_limit_bytes=vmem_limit,
        ),
    )(x2)

    # Each core broadcast its scalar partial across its (8, 128) tile; pick one
    # lane per core and combine.
    h_tv = jnp.sum(h_out[0::8, 0])
    w_tv = jnp.sum(w_out[0::8, 0])

    count_h = c * (h - 1) * w
    count_w = c * h * (w - 1)
    return tv_loss_weight * 2.0 * (h_tv / count_h + w_tv / count_w) / n


def tv_loss_ref(x, tv_loss_weight: float = 1.0):
    # Pure-JAX reference mirroring the PyTorch module.
    n, c, h, w = x.shape
    xf = x.astype(jnp.float32)
    count_h = c * (h - 1) * w
    count_w = c * h * (w - 1)
    h_tv = jnp.sum((xf[:, :, 1:, :] - xf[:, :, :-1, :]) ** 2)
    w_tv = jnp.sum((xf[:, :, :, 1:] - xf[:, :, :, :-1]) ** 2)
    return tv_loss_weight * 2.0 * (h_tv / count_h + w_tv / count_w) / n


if __name__ == "__main__":
    key = jax.random.PRNGKey(0)
    x = jax.random.normal(key, (2, 4, 16, 16), dtype=jnp.float32)

    out = jax.block_until_ready(tv_loss(x, tv_loss_weight=1.0))
    ref = jax.block_until_ready(tv_loss_ref(x, tv_loss_weight=1.0))

    assert jnp.allclose(out, ref, rtol=1e-5, atol=1e-5), (out, ref)
    print("KERNEL_OK")
</pallas_src>

<mosaic_0001>
module attributes {stable_mosaic.version = 11 : i64} {
  func.func @_tv_kernel(%arg0: i32, %arg1: i32, %arg2: memref<8x256xf32, #tpu.memory_space<vmem>>, %arg3: memref<8x128xf32, #tpu.memory_space<vmem>>, %arg4: memref<8x128xf32, #tpu.memory_space<vmem>>, %arg5: memref<1x256xf32, #tpu.memory_space<vmem>>, %arg6: memref<1x256xf32, #tpu.memory_space<vmem>>, %arg7: memref<1x256xf32, #tpu.memory_space<vmem>>, %arg8: memref<1x256xf32, #tpu.memory_space<vmem>>) attributes {dimension_semantics = [#tpu.dimension_semantics<arbitrary>, #tpu.dimension_semantics<arbitrary>], iteration_bounds = array<i64: 1, 1>, scalar_prefetch = 0 : i64, scratch_operands = 4 : i64, tpu.core_type = #tpu.core_type<tc>, window_params = [{transform_indices = @transform_0, window_bounds = array<i64: 8, 256>}, {transform_indices = @transform_1, window_bounds = array<i64: 8, 128>}, {transform_indices = @transform_2, window_bounds = array<i64: 8, 128>}]} {
    %c0_i32 = arith.constant 0 : i32
    %0 = arith.cmpi eq, %arg1, %c0_i32 : i32
    %1 = arith.extui %0 : i1 to i32
    %c0_i32_0 = arith.constant 0 : i32
    %2 = arith.cmpi ne, %1, %c0_i32_0 : i32
    scf.if %2 {
      %29 = tpu.iota {dimensions = array<i32: 1>} : vector<1x256xi32>
      %c240_i32_17 = arith.constant 240 : i32
      %30 = vector.broadcast %c240_i32_17 : i32 to vector<1x256xi32>
      %31 = arith.cmpi slt, %29, %30 : vector<1x256xi32>
      %32 = arith.extui %31 : vector<1x256xi1> to vector<1x256xi32>
      %33 = arith.sitofp %32 : vector<1x256xi32> to vector<1x256xf32>
      %c0_18 = arith.constant 0 : index
      %c0_19 = arith.constant 0 : index
      %34 = vector.load %arg7[%c0_18, %c0_19] : memref<1x256xf32, #tpu.memory_space<vmem>>, vector<1x256xf32>
      tpu.vector_store %arg7[%c0_18, %c0_19], %33 {strides = array<i32>} : memref<1x256xf32, #tpu.memory_space<vmem>>, vector<1x256xf32>,
      %c16_i32 = arith.constant 16 : i32
      %c0_i32_20 = arith.constant 0 : i32
      %35 = arith.cmpi eq, %c16_i32, %c0_i32_20 : i32
      %c1_i32 = arith.constant 1 : i32
      %36 = arith.select %35, %c1_i32, %c16_i32 : i32
      %37 = vector.broadcast %36 : i32 to vector<1x256xi32>
      %38 = arith.remsi %29, %37 : vector<1x256xi32>
      %c0_i32_21 = arith.constant 0 : i32
      %39 = vector.broadcast %c0_i32_21 : i32 to vector<1x256xi32>
      %40 = arith.cmpi ne, %38, %39 : vector<1x256xi32>
      %c0_i32_22 = arith.constant 0 : i32
      %41 = vector.broadcast %c0_i32_22 : i32 to vector<1x256xi32>
      %42 = arith.cmpi slt, %38, %41 : vector<1x256xi32>
      %c0_i32_23 = arith.constant 0 : i32
      %43 = arith.cmpi slt, %36, %c0_i32_23 : i32
      %44 = vector.broadcast %43 : i1 to vector<1x256xi1>
      %45 = vector.broadcast %44 : vector<1x256xi1> to vector<1x256xi1>
      %46 = arith.xori %42, %45 : vector<1x256xi1>
      %47 = arith.andi %46, %40 : vector<1x256xi1>
      %48 = vector.broadcast %36 : i32 to vector<1x256xi32>
      %49 = arith.addi %38, %48 : vector<1x256xi32>
      %50 = arith.select %47, %49, %38 : vector<1x256xi1>, vector<1x256xi32>
      %c15_i32 = arith.constant 15 : i32
      %51 = vector.broadcast %c15_i32 : i32 to vector<1x256xi32>
      %52 = arith.cmpi ne, %50, %51 : vector<1x256xi32>
      %53 = arith.extui %52 : vector<1x256xi1> to vector<1x256xi32>
      %54 = arith.sitofp %53 : vector<1x256xi32> to vector<1x256xf32>
      %c0_24 = arith.constant 0 : index
      %c0_25 = arith.constant 0 : index
      %55 = vector.load %arg8[%c0_24, %c0_25] : memref<1x256xf32, #tpu.memory_space<vmem>>, vector<1x256xf32>
      tpu.vector_store %arg8[%c0_24, %c0_25], %54 {strides = array<i32>} : memref<1x256xf32, #tpu.memory_space<vmem>>, vector<1x256xf32>,
      %cst_26 = arith.constant 0.000000e+00 : f32
      %56 = vector.broadcast %cst_26 : f32 to vector<1x256xf32>
      %c0_27 = arith.constant 0 : index
      %c0_28 = arith.constant 0 : index
      %57 = vector.load %arg5[%c0_27, %c0_28] : memref<1x256xf32, #tpu.memory_space<vmem>>, vector<1x256xf32>
      tpu.vector_store %arg5[%c0_27, %c0_28], %56 {strides = array<i32>} : memref<1x256xf32, #tpu.memory_space<vmem>>, vector<1x256xf32>,
      %cst_29 = arith.constant 0.000000e+00 : f32
      %58 = vector.broadcast %cst_29 : f32 to vector<1x256xf32>
      %c0_30 = arith.constant 0 : index
      %c0_31 = arith.constant 0 : index
      %59 = vector.load %arg6[%c0_30, %c0_31] : memref<1x256xf32, #tpu.memory_space<vmem>>, vector<1x256xf32>
      tpu.vector_store %arg6[%c0_30, %c0_31], %58 {strides = array<i32>} : memref<1x256xf32, #tpu.memory_space<vmem>>, vector<1x256xf32>,
    } else {
    }
    %c0 = arith.constant 0 : index
    %c0_1 = arith.constant 0 : index
    %3 = vector.load %arg2[%c0, %c0_1] : memref<8x256xf32, #tpu.memory_space<vmem>>, vector<8x256xf32>
    %c240_i32 = arith.constant 240 : i32
    %4 = tpu.dynamic_rotate %3 by %c240_i32 dim 1 : vector<8x256xf32>, i32 -> vector<8x256xf32>
    %c255_i32 = arith.constant 255 : i32
    %5 = tpu.dynamic_rotate %3 by %c255_i32 dim 1 : vector<8x256xf32>, i32 -> vector<8x256xf32>
    %6 = arith.subf %4, %3 : vector<8x256xf32>
    %c0_2 = arith.constant 0 : index
    %c0_3 = arith.constant 0 : index
    %7 = vector.load %arg7[%c0_2, %c0_3] : memref<1x256xf32, #tpu.memory_space<vmem>>, vector<1x256xf32>
    %8 = vector.broadcast %7 : vector<1x256xf32> to vector<8x256xf32>
    %9 = arith.mulf %6, %8 : vector<8x256xf32>
    %10 = arith.subf %5, %3 : vector<8x256xf32>
    %c0_4 = arith.constant 0 : index
    %c0_5 = arith.constant 0 : index
    %11 = vector.load %arg8[%c0_4, %c0_5] : memref<1x256xf32, #tpu.memory_space<vmem>>, vector<1x256xf32>
    %12 = vector.broadcast %11 : vector<1x256xf32> to vector<8x256xf32>
    %13 = arith.mulf %10, %12 : vector<8x256xf32>
    %14 = arith.mulf %9, %9 : vector<8x256xf32>
    %15 = arith.mulf %13, %13 : vector<8x256xf32>
    %c0_6 = arith.constant 0 : index
    %c0_7 = arith.constant 0 : index
    %16 = vector.load %arg5[%c0_6, %c0_7] : memref<1x256xf32, #tpu.memory_space<vmem>>, vector<1x256xf32>
    %cst = arith.constant dense<0.000000e+00> : vector<256xf32>
    %17 = vector.multi_reduction <add>, %14, %cst [0] : vector<8x256xf32> to vector<256xf32>
    %18 = vector.shape_cast %17 : vector<256xf32> to vector<1x256xf32>
    %19 = arith.addf %16, %18 : vector<1x256xf32>
    %c0_8 = arith.constant 0 : index
    %c0_9 = arith.constant 0 : index
    %20 = vector.load %arg5[%c0_8, %c0_9] : memref<1x256xf32, #tpu.memory_space<vmem>>, vector<1x256xf32>
    tpu.vector_store %arg5[%c0_8, %c0_9], %19 {strides = array<i32>} : memref<1x256xf32, #tpu.memory_space<vmem>>, vector<1x256xf32>,
    %c0_10 = arith.constant 0 : index
    %c0_11 = arith.constant 0 : index
    %21 = vector.load %arg6[%c0_10, %c0_11] : memref<1x256xf32, #tpu.memory_space<vmem>>, vector<1x256xf32>
    %cst_12 = arith.constant dense<0.000000e+00> : vector<256xf32>
    %22 = vector.multi_reduction <add>, %15, %cst_12 [0] : vector<8x256xf32> to vector<256xf32>
    %23 = vector.shape_cast %22 : vector<256xf32> to vector<1x256xf32>
    %24 = arith.addf %21, %23 : vector<1x256xf32>
    %c0_13 = arith.constant 0 : index
    %c0_14 = arith.constant 0 : index
    %25 = vector.load %arg6[%c0_13, %c0_14] : memref<1x256xf32, #tpu.memory_space<vmem>>, vector<1x256xf32>
    tpu.vector_store %arg6[%c0_13, %c0_14], %24 {strides = array<i32>} : memref<1x256xf32, #tpu.memory_space<vmem>>, vector<1x256xf32>,
    %c0_i32_15 = arith.constant 0 : i32
    %26 = arith.cmpi eq, %arg1, %c0_i32_15 : i32
    %27 = arith.extui %26 : i1 to i32
    %c0_i32_16 = arith.constant 0 : i32
    %28 = arith.cmpi ne, %27, %c0_i32_16 : i32
    scf.if %28 {
      %cst_17 = arith.constant 0.000000e+00 : f32
      %29 = vector.broadcast %cst_17 : f32 to vector<8x128xf32>
      %c0_18 = arith.constant 0 : index
      %c0_19 = arith.constant 0 : index
      %30 = vector.load %arg5[%c0_18, %c0_19] : memref<1x256xf32, #tpu.memory_space<vmem>>, vector<1x256xf32>
      %31 = vector.shape_cast %30 : vector<1x256xf32> to vector<1x1x256xf32>
      %cst_20 = arith.constant dense<0.000000e+00> : vector<1xf32>
      %32 = vector.multi_reduction <add>, %31, %cst_20 [1, 2] : vector<1x1x256xf32> to vector<1xf32>
      %33 = vector.shape_cast %32 : vector<1xf32> to vector<1x1x1xf32>
      %34 = vector.extract %33[0, 0, 0] : f32 from vector<1x1x1xf32>
      %35 = vector.broadcast %34 : f32 to vector<8x128xf32>
      %36 = arith.addf %29, %35 : vector<8x128xf32>
      %c0_21 = arith.constant 0 : index
      %c0_22 = arith.constant 0 : index
      %37 = vector.load %arg3[%c0_21, %c0_22] : memref<8x128xf32, #tpu.memory_space<vmem>>, vector<8x128xf32>
      tpu.vector_store %arg3[%c0_21, %c0_22], %36 {strides = array<i32>} : memref<8x128xf32, #tpu.memory_space<vmem>>, vector<8x128xf32>,
      %cst_23 = arith.constant 0.000000e+00 : f32
      %38 = vector.broadcast %cst_23 : f32 to vector<8x128xf32>
      %c0_24 = arith.constant 0 : index
      %c0_25 = arith.constant 0 : index
      %39 = vector.load %arg6[%c0_24, %c0_25] : memref<1x256xf32, #tpu.memory_space<vmem>>, vector<1x256xf32>
      %40 = vector.shape_cast %39 : vector<1x256xf32> to vector<1x1x256xf32>
      %cst_26 = arith.constant dense<0.000000e+00> : vector<1xf32>
      %41 = vector.multi_reduction <add>, %40, %cst_26 [1, 2] : vector<1x1x256xf32> to vector<1xf32>
      %42 = vector.shape_cast %41 : vector<1xf32> to vector<1x1x1xf32>
      %43 = vector.extract %42[0, 0, 0] : f32 from vector<1x1x1xf32>
      %44 = vector.broadcast %43 : f32 to vector<8x128xf32>
      %45 = arith.addf %38, %44 : vector<8x128xf32>
      %c0_27 = arith.constant 0 : index
      %c0_28 = arith.constant 0 : index
      %46 = vector.load %arg4[%c0_27, %c0_28] : memref<8x128xf32, #tpu.memory_space<vmem>>, vector<8x128xf32>
      tpu.vector_store %arg4[%c0_27, %c0_28], %45 {strides = array<i32>} : memref<8x128xf32, #tpu.memory_space<vmem>>, vector<8x128xf32>,
    } else {
    }
    return
  }
  func.func @transform_0(%arg0: i32, %arg1: i32) -> (i32, i32) {
    %c1_i32 = arith.constant 1 : i32
    %0 = arith.muli %arg0, %c1_i32 : i32
    %1 = arith.addi %0, %arg1 : i32
    %c0_i32 = arith.constant 0 : i32
    %c0_i32_0 = arith.constant 0 : i32
    return %1, %c0_i32 : i32, i32
  }
  func.func @transform_1(%arg0: i32, %arg1: i32) -> (i32, i32) {
    %c0_i32 = arith.constant 0 : i32
    %c0_i32_0 = arith.constant 0 : i32
    return %arg0, %c0_i32 : i32, i32
  }
  func.func @transform_2(%arg0: i32, %arg1: i32) -> (i32, i32) {
    %c0_i32 = arith.constant 0 : i32
    %c0_i32_0 = arith.constant 0 : i32
    return %arg0, %c0_i32 : i32, i32
  }
}

</mosaic_0001>

<bundles_post_ra>
// kernel: tpu_custom_call.1
= control target key start
LH: loop header
LB: loop body
LE: loop exit
PB: predicated region body
PF: predicated region fallthrough
CT: control target
= control target key end

     0   :  { %8 = vsyncpa [#allocation7], 0  ;;  %s518_s0 = inlined_call_operand.hbm [shape: f32[8,256], index: 0, kind: input, shape index: {}]   ;;  %s519_s1 = inlined_call_operand.hbm [shape: f32[8,128], index: 1, kind: output, shape index: {0}]   ;;  %s520_s2 = inlined_call_operand.hbm [shape: f32[8,128], index: 2, kind: output, shape index: {1}]  }
   0x1   :  { %9 = vsyncpa [#allocation8], 0 }
   0x2   :  { %10 = vsyncpa [#allocation11], 0  ;;  %s414_s9 = smov [#allocation6]   ;;  %s342_s13 = scalar_lea.hbm %s518_s0, 256 }
   0x3   :  { %s21_s10 = sshll.u32 %s414_s9, 4  ;;  %p343_p0 = scmp.ne.s32.totalorder %s518_s0, %s342_s13  ;;  %s22_s10 = int_to_ptr.vmem [resolvable:$true] %s21_s10 }
   0x4   :  { %p346_p1 = scmp.lt.u32.totalorder %s342_s13, %s518_s0 }
   0x6   :  { %p348_p2 = pnand %p346_p1, %p343_p0 }
   0x8   :  { %351 = shalt.err (!%p348_p2)
}
   0x9   :  { %s352_s18 = scalar_lea.vmem %s22_s10, 256  ;;  %p357_p4 = scmp.lt.s32.totalorder %s22_s10, %s22_s10 }
   0xa   :  { %p353_p3 = scmp.ne.s32.totalorder %s22_s10, %s352_s18  ;;  %p358_p5 = scmp.lt.s32.totalorder %s352_s18, %s352_s18 }
   0xc   :  { %p359_p6 = por %p358_p5, %p357_p4 }
   0xe   :  { %p360_p7 = pnand %p359_p6, %p353_p3 }
  0x10   :  { %363 = shalt.err (!%p360_p7)
}
  0x11   :  { %24 = dma.hbm_to_vmem [thread:$0]  %s518_s0, 256, %s22_s10, [#allocation7]  }
  0x12   :  { %408 = dma.done.wait [#allocation7], 256  }
  0x13   :  { %409 = vsyncadd [#allocation7], 4294967040  ;;  %v33_v0 = vlaneseq  ;;  %v415_v2 = vmov 1966171168   ;;  %v416_v6 = vmov 0.0   ;;  %v116_v12 = vld [vmem:[#allocation6] sm:$0xff] }
  0x14   :  { %v46_v3 = vunpack.c.l.s4 %v415_v2  ;;  %s417_s0 = smov 127   ;;  %s418_s21 = smov 112   ;;  %v419_v15 = vmov 1.0   ;;  %v117_v17 = vld [vmem:[#allocation6 + $0x8] sm:$0xff]  ;;  %vm255_vm6 = vcmask 1040384  }
  0x15   :  { %v34_v1 = vand.u32 127, %v33_v0  ;;  %v49_v4 = vshrl.u32 %v33_v0, 7  ;;  %vm449_vm0 = vcmp.lt.s32.totalorder %v33_v0, 256  ;;  %127 = vrot.lane.b32.xlu1 %v116_v12, %s417_s0  ;;  %118 = vrot.lane.b32.xlu0 %v116_v12, %s418_s21  ;;  %s420_s22 = smov [#allocation9]   ;;  %s421_s24 = smov [#allocation10]  }
  0x16   :  { %114 = vst.msk [vmem:[#allocation2] sm:$0x3] %vm449_vm0, %v416_v6  ;;  %115 = vst.msk [vmem:[#allocation3] sm:$0x3] %vm449_vm0, %v416_v6  ;;  %v47_v8 = vunpack.c.0.s8 %v46_v3  ;;  %s304_s23 = sshll.u32 %s420_s22, 4  ;;  %s314_s25 = sshll.u32 %s421_s24, 4  ;;  %s305_s23 = int_to_ptr.vmem [resolvable:$true] %s304_s23  ;;  %s487_s25 = int_to_ptr.vmem [resolvable:$true] %s314_s25 }
  0x17   :  { %v35_v7 = vadd.s32 128, %v34_v1  ;;  %v69_v9 = vand.u32 15, %v34_v1  ;;  %v467_v26 = vsub.s32 0, %v49_v4  ;;  %v469_v27 = vsub.s32 1, %v49_v4  ;;  %s364_s28 = scalar_lea.vmem %s305_s23, 128  ;;  %p369_p9 = scmp.lt.s32.totalorder %s305_s23, %s305_s23 }
  0x18   :  { %v457_v10 = vsub.s32 %v47_v8, %v49_v4  ;;  %vm131_vm4 = vcmp.lt.s32.totalorder %v34_v1, 127  ;;  %vm124_vm5 = vcmp.lt.s32.totalorder %v34_v1, 112  ;;  %p365_p8 = scmp.ne.s32.totalorder %s305_s23, %s364_s28  ;;  %p370_p10 = scmp.lt.s32.totalorder %s364_s28, %s364_s28 }
  0x19   :  { %vm37_vm1 = vcmp.lt.s32.totalorder %v35_v7, 240  ;;  %v76_v11 = vand.u32 15, %v35_v7  ;;  %vm89_vm2 = vcmp.ne.s32.totalorder %v69_v9, 15  ;;  %129 = vrot.lane.b32.xlu1 %v117_v17, %s417_s0  ;;  %120 = vrot.lane.b32.xlu0 %v117_v17, %s418_s21 }
  0x1a   :  { %v327_v13 = vsel %vm37_vm1, 1.0, %v416_v6  ;;  %v328_v14 = vsel %vm89_vm2, 1.0, %v416_v6  ;;  %p371_p11 = por %p370_p10, %p369_p9 }
  0x1b   :  { %v44_v16 = vcombine.low %v419_v15, %v327_v13  ;;  %vm90_vm3 = vcmp.ne.s32.totalorder %v76_v11, 15 }
  0x1c   :  { %v329_v18 = vsel %vm90_vm3, 1.0, %v416_v6  ;;  %p372_p12 = pnand %p371_p11, %p365_p8 }
  0x1d   :  { %v51_v19 = vrot.slane %v44_v16, %v457_v10  ;;  %v97_v20 = vcombine.low %v328_v14, %v329_v18  ;;  %v207_v18 = vld [vmem:[#allocation3] sm:$0x3] }
  0x1f   :  { %v58_v21 = vrot.slane %v51_v19, %v457_v10  ;;  %v104_v22 = vrot.slane %v97_v20, %v457_v10  ;;  %v170_v19 = vld [vmem:[#allocation2] sm:$0x3] }
  0x21   :  { %v111_v23 = vrot.slane %v104_v22, %v457_v10  ;;  %64 = vst.msk [vmem:[#allocation4] sm:$0x3] %vm449_vm0, %v58_v21 }
  0x23   :  { %113 = vst.msk [vmem:[#allocation5] sm:$0x3] %vm449_vm0, %v111_v23 }
  0x28   :  { %v136_v29 = vld [vmem:[#allocation4] sm:$0x3] }
  0x29   :  { %v141_v34 = vrot.slane %v136_v29, %v467_v26  ;;  %v145_v35 = vrot.slane %v136_v29, %v469_v27 }
  0x2a   :  { %v152_v28 = vld [vmem:[#allocation5] sm:$0x3] }
  0x2b   :  { %v157_v31 = vrot.slane %v152_v28, %v467_v26  ;;  %v161_v32 = vrot.slane %v152_v28, %v469_v27 }
  0x87   :  { %v128_v24 = vpop.permute.xlu1 %127  ;;  %v119_v25 = vpop.permute.xlu0 %118 }
  0x8b   :  { %v130_v30 = vpop.permute.xlu1 %129  ;;  %v121_v33 = vpop.permute.xlu0 %120 }
  0x8c   :  { %v132_v36 = vsel %vm131_vm4, %v128_v24, %v130_v30  ;;  %v133_v37 = vsel %vm131_vm4, %v130_v30, %v128_v24  ;;  %v125_v38 = vsel %vm124_vm5, %v119_v25, %v121_v33  ;;  %v126_v39 = vsel %vm124_vm5, %v121_v33, %v119_v25 }
  0x8d   :  { %v150_v40 = vsub.f32 %v132_v36, %v116_v12  ;;  %v151_v41 = vsub.f32 %v133_v37, %v117_v17  ;;  %v134_v42 = vsub.f32 %v125_v38, %v116_v12  ;;  %v135_v43 = vsub.f32 %v126_v39, %v117_v17 }
  0x8f   :  { %v164_v44 = vmul.f32 %v157_v31, %v150_v40  ;;  %v165_v45 = vmul.f32 %v161_v32, %v151_v41  ;;  %v148_v46 = vmul.f32 %v141_v34, %v134_v42  ;;  %v149_v47 = vmul.f32 %v145_v35, %v135_v43 }
  0x91   :  { %v168_v48 = vmul.f32 %v164_v44, %v164_v44  ;;  %v169_v49 = vmul.f32 %v165_v45, %v165_v45  ;;  %v166_v50 = vmul.f32 %v148_v46, %v148_v46  ;;  %v167_v51 = vmul.f32 %v149_v47, %v149_v47 }
  0x93   :  { %v208_v52 = vrot.slane %v168_v48, 4  ;;  %v214_v53 = vrot.slane %v169_v49, 4  ;;  %v171_v54 = vrot.slane %v166_v50, 4  ;;  %v177_v55 = vrot.slane %v167_v51, 4 }
  0x95   :  { %v209_v56 = vadd.f32 %v208_v52, %v168_v48  ;;  %v215_v57 = vadd.f32 %v214_v53, %v169_v49  ;;  %v172_v58 = vadd.f32 %v171_v54, %v166_v50  ;;  %v178_v59 = vadd.f32 %v177_v55, %v167_v51 }
  0x97   :  { %v210_v60 = vrot.slane %v209_v56, 2  ;;  %v216_v61 = vrot.slane %v215_v57, 2  ;;  %v173_v62 = vrot.slane %v172_v58, 2  ;;  %v179_v63 = vrot.slane %v178_v59, 2 }
  0x99   :  { %v211_v0 = vadd.f32 %v210_v60, %v209_v56  ;;  %v217_v1 = vadd.f32 %v216_v61, %v215_v57  ;;  %v174_v2 = vadd.f32 %v173_v62, %v172_v58  ;;  %v180_v3 = vadd.f32 %v179_v63, %v178_v59 }
  0x9b   :  { %v212_v4 = vrot.slane %v211_v0, 1  ;;  %v218_v6 = vrot.slane %v217_v1, 1  ;;  %v175_v7 = vrot.slane %v174_v2, 1  ;;  %v181_v8 = vrot.slane %v180_v3, 1 }
  0x9d   :  { %v213_v9 = vadd.f32 %v212_v4, %v211_v0  ;;  %v219_v11 = vadd.f32 %v218_v6, %v217_v1  ;;  %v176_v12 = vadd.f32 %v175_v7, %v174_v2  ;;  %v182_v13 = vadd.f32 %v181_v8, %v180_v3 }
  0x9f   :  { %v222_v14 = vcombine.low %v213_v9, %v219_v11  ;;  %v185_v15 = vcombine.low %v176_v12, %v182_v13 }
  0xa1   :  { %v229_v16 = vrot.slane %v222_v14, %v457_v10  ;;  %v192_v17 = vrot.slane %v185_v15, %v457_v10 }
  0xa3   :  { %v236_v20 = vrot.slane %v229_v16, %v457_v10  ;;  %v199_v21 = vrot.slane %v192_v17, %v457_v10 }
  0xa5   :  { %v238_v22 = vadd.f32 %v236_v20, %v207_v18  ;;  %v201_v23 = vadd.f32 %v199_v21, %v170_v19 }
  0xa7   :  { %239 = vst.msk [vmem:[#allocation3] sm:$0x3] %vm449_vm0, %v238_v22  ;;  %206 = vst.msk [vmem:[#allocation2] sm:$0x3] %vm449_vm0, %v201_v23 }
  0xae   :  { %v271_v24 = vld [vmem:[#allocation3] sm:$0x3]  ;;  %v243_v25 = vld [vmem:[#allocation2] sm:$0x3] }
  0xaf   :  { %v276_v28 = vrot.slane %v271_v24, %v467_v26  ;;  %v280_v29 = vrot.slane %v271_v24, %v469_v27  ;;  %v248_v30 = vrot.slane %v243_v25, %v467_v26  ;;  %v252_v31 = vrot.slane %v243_v25, %v469_v27 }
  0xb1   :  { %v283_v10 = vsel %vm255_vm6, %v276_v28, 0.0  ;;  %v284_v32 = vsel %vm255_vm6, %v280_v29, 0.0  ;;  %v256_v33 = vsel %vm255_vm6, %v248_v30, 0.0  ;;  %v257_v34 = vsel %vm255_vm6, %v252_v31, 0.0 }
  0xb2   :  { %v285_v35 = vadd.f32 %v284_v32, %v283_v10  ;;  %v258_v36 = vadd.f32 %v257_v34, %v256_v33 }
  0xb4   :  { %286 = vadd.xlane.f32.xlu1 %v285_v35  ;;  %259 = vadd.xlane.f32.xlu0 %v258_v36 }
 0x141   :  { %v287_v5 = vpop.xlane.xlu1 %286  ;;  %v260_v37 = vpop.xlane.xlu0 %259 }
 0x142   :  { %v288_v38 = vrot.slane %v287_v5, 4  ;;  %v261_v39 = vrot.slane %v260_v37, 4 }
 0x144   :  { %v289_v40 = vadd.f32 %v288_v38, %v287_v5  ;;  %v262_v41 = vadd.f32 %v261_v39, %v260_v37 }
 0x146   :  { %v290_v42 = vrot.slane %v289_v40, 2  ;;  %v263_v43 = vrot.slane %v262_v41, 2 }
 0x148   :  { %v291_v44 = vadd.f32 %v290_v42, %v289_v40  ;;  %v264_v26 = vadd.f32 %v263_v43, %v262_v41 }
 0x14a   :  { %v265_v45 = vrot.slane %v264_v26, 1  ;;  %v292_v27 = vrot.slane %v291_v44, 1 }
 0x14c   :  { %v266_v46 = vadd.f32 %v265_v45, %v264_v26  ;;  %v293_v47 = vadd.f32 %v292_v27, %v291_v44 }
 0x14e   :  { %330 = vpush %v266_v46 }
 0x14f   :  { %332 = vpush %v293_v47 }
 0x17f   :  { %s331_s26 = spop %330 }
 0x180   :  { %v268_v48 = vstv %s331_s26  ;;  %s333_s27 = spop %332 }
 0x181   :  { %270 = vst [vmem:[#allocation9] sm:$0xff] %v268_v48  ;;  %v295_v49 = vstv %s333_s27 }
 0x182   :  { %297 = vst [vmem:[#allocation10] sm:$0xff] %v295_v49 }
 0x183   :  { %375 = shalt.err (!%p372_p12)
}
 0x184   :  { %s376_s3 = scalar_lea.hbm %s519_s1, 128 }
 0x185   :  { %p377_p13 = scmp.ne.s32.totalorder %s519_s1, %s376_s3  ;;  %p380_p0 = scmp.lt.u32.totalorder %s376_s3, %s519_s1 }
 0x187   :  { %p382_p1 = pnand %p380_p0, %p377_p13 }
 0x189   :  { %385 = shalt.err (!%p382_p1)
}
 0x18a   :  { %307 = dma.vmem_to_hbm [thread:$0]  %s305_s23, 128, %s519_s1, [#allocation8]  }
 0x18b   :  { %s386_s10 = scalar_lea.vmem %s487_s25, 128  ;;  %p391_p3 = scmp.lt.s32.totalorder %s487_s25, %s487_s25 }
 0x18c   :  { %p387_p2 = scmp.ne.s32.totalorder %s487_s25, %s386_s10  ;;  %p392_p4 = scmp.lt.s32.totalorder %s386_s10, %s386_s10 }
 0x18e   :  { %p393_p5 = por %p392_p4, %p391_p3 }
 0x190   :  { %p394_p6 = pnand %p393_p5, %p387_p2 }
 0x192   :  { %397 = shalt.err (!%p394_p6)
}
 0x193   :  { %s398_s13 = scalar_lea.hbm %s520_s2, 128 }
 0x194   :  { %p399_p7 = scmp.ne.s32.totalorder %s520_s2, %s398_s13  ;;  %p402_p8 = scmp.lt.u32.totalorder %s398_s13, %s520_s2 }
 0x196   :  { %p404_p9 = pnand %p402_p8, %p399_p7 }
 0x198   :  { %407 = shalt.err (!%p404_p9)
}
 0x199   :  { %317 = dma.vmem_to_hbm [thread:$0]  %s487_s25, 128, %s520_s2, [#allocation11]  }
 0x19a   :  { %410 = dma.done.wait [#allocation8], 128  }
 0x19b   :  { %411 = vsyncadd [#allocation8], 4294967168 }
 0x19c   :  { %412 = dma.done.wait [#allocation11], 128  }
 0x19d   :  { %413 = vsyncadd [#allocation11], 4294967168 }
 0x19e   :  { %324 = vsyncpa [#allocation7], 1 }
 0x19f   :  { %325 = vsyncpa [#allocation8], 1 }
 0x1a0   :  { %326 = vsyncpa [#allocation11], 1 }

</bundles_post_ra>
